<compile_context>
chip_gen: v6e
topology: v6e:2x2x1
jax: 0.10.0
libtpu: 0.0.40
codegen_flags: <defaults>
</compile_context>

<pallas_src>
import functools

import jax
import jax.numpy as jnp
from jax.experimental import pallas as pl
from jax.experimental.pallas import tpu as pltpu


# Sublane packing multiple per element byte-width (f32 -> 8, bf16 -> 16, i8 -> 32).
_SUBLANE_MULT = {4: 8, 2: 16, 1: 32}


def _double_sigmoid_math(x, shift, magnitude, compute_dtype):
    """Shared math: sigmoid(-m(x+s)) + sigmoid(m(x-s)) == 1 + (tanh(u-c)-tanh(u+c))/2."""
    x = x.astype(compute_dtype)
    half_m = 0.5 * float(magnitude)
    c = half_m * float(shift)
    u = half_m * x
    return 1.0 + 0.5 * (jnp.tanh(u - c) - jnp.tanh(u + c))


def _double_sigmoid_kernel(shift, magnitude, compute_dtype):
    """Kernel body with shift/magnitude baked in as static hyperparameters."""
    half_m = 0.5 * float(magnitude)
    c = half_m * float(shift)

    def kernel(x_ref, o_ref):
        x = x_ref[...].astype(compute_dtype)
        u = half_m * x                 # hoisted shared term (one vmul)
        tb = jnp.tanh(u - c)           # EUP
        ta = jnp.tanh(u + c)           # EUP
        o_ref[...] = (1.0 + 0.5 * (tb - ta)).astype(o_ref.dtype)

    return kernel


@functools.lru_cache(maxsize=1)
def _tpu_generation():
    try:
        kind = jax.devices()[0].device_kind.lower()
    except Exception:
        return "unknown"
    for tag in ("v7", "v6", "v5"):
        if tag in kind:
            return tag
    return "unknown"


def _generation_config():
    """(generation, target block bytes, vmem_limit_bytes or None, min grid steps)."""
    gen = _tpu_generation()
    if gen == "v7":
        # 64 MiB physical VMEM / TC: 4 x 10 MiB = 40 MiB, explicit 48 MiB limit.
        return gen, 10 * 1024 * 1024, 48 * 1024 * 1024, 2
    if gen == "v6":
        # 128 MiB physical: 4 x 8 MiB = 32 MiB; raise the scoped limit for headroom.
        return gen, 8 * 1024 * 1024, 48 * 1024 * 1024, 1
    if gen == "v5":
        # Stay inside the 16 MiB default scoped VMEM: 4 x 3 MiB = 12 MiB.
        return gen, 3 * 1024 * 1024, None, 1
    return gen, 3 * 1024 * 1024, None, 1


def _choose_lane(total):
    """Widest lane-dense last dim. Returns (lane, main) where main = lane-divisible prefix."""
    lanes = (4096, 2048, 1024, 512, 256, 128)
    for lane in lanes:                       # prefer an exact split (no tail at all)
        if total % lane == 0:
            return lane, total
    for lane in lanes:                       # ragged: widest lane with >= 1 full row
        if total >= lane:
            return lane, (total // lane) * lane
    return 128, 0                            # total < 128 elements: all tail


def _double_sigmoid_impl(x, shift, magnitude, *, min_pallas_elements, target_block_bytes):
    orig_shape = x.shape
    orig_dtype = x.dtype
    total = x.size
    if total == 0:
        return x

    gen, default_block_bytes, vmem_limit, min_steps = _generation_config()
    if target_block_bytes is None:
        target_block_bytes = default_block_bytes

    # Tiny tensors: XLA's fused elementwise beats the pallas_call launch overhead.
    if total < min_pallas_elements:
        return _double_sigmoid_math(x, shift, magnitude, jnp.float32).astype(orig_dtype)

    # bf16-native compute on v6e/v7x; f32 elsewhere (v5e has no bf16 VPU/EUP).
    compute_dtype = (jnp.bfloat16
                     if (orig_dtype == jnp.bfloat16 and gen in ("v6", "v7"))
                     else jnp.float32)

    lane, main = _choose_lane(total)
    if main == 0:
        return _double_sigmoid_math(x, shift, magnitude, jnp.float32).astype(orig_dtype)

    tail = total - main
    x_flat = x.reshape(-1)
    x2d = (x_flat if tail == 0 else x_flat[:main]).reshape(main // lane, lane)
    rows = main // lane

    elem_bytes = jnp.dtype(orig_dtype).itemsize
    sub_mult = _SUBLANE_MULT.get(elem_bytes, 8)

    # Rows per block targeting the generation's block size, sublane-rounded.
    block_rows = max(sub_mult, target_block_bytes // (lane * elem_bytes))
    block_rows = (block_rows // sub_mult) * sub_mult

    # v7x has 2 TensorCores: never collapse to a 1-step grid when there is
    # enough data for two full blocks, so both cores (and DMA queues) get work.
    if min_steps >= 2 and rows >= 2 * sub_mult:
        half = (((rows + 1) // 2) + sub_mult - 1) // sub_mult * sub_mult
        block_rows = min(block_rows, half)

    if block_rows >= rows:
        block_rows = rows  # single step: block shape equals the full array dims

    grid = (pl.cdiv(rows, block_rows),)

    out2d = pl.pallas_call(
        _double_sigmoid_kernel(shift, magnitude, compute_dtype),
        out_shape=jax.ShapeDtypeStruct((rows, lane), orig_dtype),
        grid_spec=pltpu.PrefetchScalarGridSpec(
            num_scalar_prefetch=0,
            grid=grid,
            in_specs=[pl.BlockSpec((block_rows, lane), lambda i: (i, 0))],
            out_specs=pl.BlockSpec((block_rows, lane), lambda i: (i, 0)),
        ),
        compiler_params=pltpu.CompilerParams(
            dimension_semantics=("parallel",),
            vmem_limit_bytes=vmem_limit,
        ),
    )(x2d)

    out_flat = out2d.reshape(-1)
    if tail:
        # Tail (< lane elements): plain jnp, no full-array pad/slice copies.
        tail_out = _double_sigmoid_math(
            x_flat[main:], shift, magnitude, jnp.float32).astype(orig_dtype)
        out_flat = jnp.concatenate([out_flat, tail_out])
    return out_flat.reshape(orig_shape)


@functools.partial(
    jax.jit,
    static_argnums=(1, 2),
    static_argnames=("min_pallas_elements", "target_block_bytes"),
)
def double_sigmoid(x, shift, magnitude, *, min_pallas_elements=65536,
                   target_block_bytes=None):
    """Apply DoubleSigmoid elementwise to a tensor via a Pallas TPU kernel."""
    return _double_sigmoid_impl(
        x, shift, magnitude,
        min_pallas_elements=min_pallas_elements,
        target_block_bytes=target_block_bytes)


def double_sigmoid_ref(x, shift, magnitude):
    """Pure-JAX reference for correctness checking."""
    return (jax.nn.sigmoid(-magnitude * (x + shift))
            + jax.nn.sigmoid(magnitude * (x - shift)))


if __name__ == "__main__":
    shift = 0.5       # module hyperparameter
    magnitude = 4.0   # module hyperparameter
    key = jax.random.PRNGKey(0)

    # Primary small NCHW-style input: batch=2, C=4, H=W=16.
    x = jax.random.normal(key, (2, 4, 16, 16), dtype=jnp.float32)

    # 1) Force the Pallas path on the tiny demo input (fallback disabled).
    y = jax.block_until_ready(double_sigmoid(x, shift, magnitude, min_pallas_elements=0))
    y_ref = double_sigmoid_ref(x, shift, magnitude)
    assert y.shape == x.shape and y.dtype == x.dtype
    assert jnp.allclose(y, y_ref, atol=1e-5, rtol=1e-5), "mismatch (pallas, small)"

    # 2) Ragged total (not a multiple of 128): kernel on the prefix + jnp tail.
    x2 = jax.random.normal(jax.random.PRNGKey(0), (3, 5, 7, 11), dtype=jnp.float32)
    y2 = jax.block_until_ready(double_sigmoid(x2, shift, magnitude, min_pallas_elements=0))
    assert jnp.allclose(y2, double_sigmoid_ref(x2, shift, magnitude),
                        atol=1e-5, rtol=1e-5), "mismatch (pallas, ragged)"

    # 3) Multi-step grid (small tensor, tiny block override to exercise tiling).
    x3 = jax.random.normal(jax.random.PRNGKey(0), (4, 8, 64, 64), dtype=jnp.float32)
    y3 = jax.block_until_ready(
        double_sigmoid(x3, shift, magnitude, target_block_bytes=64 * 1024))
    assert jnp.allclose(y3, double_sigmoid_ref(x3, shift, magnitude),
                        atol=1e-5, rtol=1e-5), "mismatch (pallas, multi-step)"

    # 4) Default path: tiny inputs take the fused-jnp fallback.
    y4 = jax.block_until_ready(double_sigmoid(x, shift, magnitude))
    assert jnp.allclose(y4, y_ref, atol=1e-5, rtol=1e-5), "mismatch (fallback)"

    print("KERNEL_OK")
</pallas_src>

<mosaic_0001>
module attributes {stable_mosaic.version = 11 : i64} {
  func.func @kernel(%arg0: i32, %arg1: memref<1x2048xf32, #tpu.memory_space<vmem>>, %arg2: memref<1x2048xf32, #tpu.memory_space<vmem>>) attributes {dimension_semantics = [#tpu.dimension_semantics<parallel>], iteration_bounds = array<i64: 1>, scalar_prefetch = 0 : i64, scratch_operands = 0 : i64, tpu.core_type = #tpu.core_type<tc>, window_params = [{transform_indices = @transform_0, window_bounds = array<i64: 1, 2048>}, {transform_indices = @transform_1, window_bounds = array<i64: 1, 2048>}]} {
    %c0 = arith.constant 0 : index
    %c0_0 = arith.constant 0 : index
    %0 = vector.load %arg1[%c0, %c0_0] : memref<1x2048xf32, #tpu.memory_space<vmem>>, vector<1x2048xf32>
    %cst = arith.constant 2.000000e+00 : f32
    %1 = vector.broadcast %cst : f32 to vector<1x2048xf32>
    %2 = arith.mulf %1, %0 : vector<1x2048xf32>
    %cst_1 = arith.constant 1.000000e+00 : f32
    %3 = vector.broadcast %cst_1 : f32 to vector<1x2048xf32>
    %4 = arith.subf %2, %3 : vector<1x2048xf32>
    %5 = math.tanh %4 : vector<1x2048xf32>
    %cst_2 = arith.constant 1.000000e+00 : f32
    %6 = vector.broadcast %cst_2 : f32 to vector<1x2048xf32>
    %7 = arith.addf %2, %6 : vector<1x2048xf32>
    %8 = math.tanh %7 : vector<1x2048xf32>
    %9 = arith.subf %5, %8 : vector<1x2048xf32>
    %cst_3 = arith.constant 5.000000e-01 : f32
    %10 = vector.broadcast %cst_3 : f32 to vector<1x2048xf32>
    %11 = arith.mulf %10, %9 : vector<1x2048xf32>
    %cst_4 = arith.constant 1.000000e+00 : f32
    %12 = vector.broadcast %cst_4 : f32 to vector<1x2048xf32>
    %13 = arith.addf %12, %11 : vector<1x2048xf32>
    %c0_5 = arith.constant 0 : index
    %c0_6 = arith.constant 0 : index
    %14 = vector.load %arg2[%c0_5, %c0_6] : memref<1x2048xf32, #tpu.memory_space<vmem>>, vector<1x2048xf32>
    tpu.vector_store %arg2[%c0_5, %c0_6], %13 {strides = array<i32>} : memref<1x2048xf32, #tpu.memory_space<vmem>>, vector<1x2048xf32>,
    return
  }
  func.func @transform_0(%arg0: i32) -> (i32, i32) {
    %c0_i32 = arith.constant 0 : i32
    %c0_i32_0 = arith.constant 0 : i32
    return %arg0, %c0_i32 : i32, i32
  }
  func.func @transform_1(%arg0: i32) -> (i32, i32) {
    %c0_i32 = arith.constant 0 : i32
    %c0_i32_0 = arith.constant 0 : i32
    return %arg0, %c0_i32 : i32, i32
  }
}

</mosaic_0001>

<bundles_post_ra>
// kernel: double_sigmoid.1
= control target key start
LH: loop header
LB: loop body
LE: loop exit
PB: predicated region body
PF: predicated region fallthrough
CT: control target
= control target key end

     0   :  { %s64_s0 = inlined_call_operand.vmem [shape: f32[1,2048], index: 0, kind: input, shape index: {}]   ;;  %s65_s1 = inlined_call_operand.vmem [shape: f32[1,2048], index: 1, kind: output, shape index: {}]  }
   0x1   :  { %v8_v0 = vld [vmem:[%s64_s0] sm:$0xff]  ;;  %v9_v1 = vld [vmem:[%s64_s0 + $0x8] sm:$0xff] }
   0x2   :  { %v10_v2 = vmul.f32 2.0, %v8_v0  ;;  %v11_v3 = vmul.f32 2.0, %v9_v1 }
   0x4   :  { %v32_v4 = vadd.f32 -1.0, %v10_v2  ;;  %v16_v5 = vadd.f32 1.0, %v10_v2  ;;  %v33_v6 = vadd.f32 -1.0, %v11_v3  ;;  %v17_v7 = vadd.f32 1.0, %v11_v3 }
   0x6   :  { %34 = vtanh.f32 %v32_v4 }
   0x7   :  { %36 = vtanh.f32 %v16_v5 }
   0x8   :  { %38 = vtanh.f32 %v33_v6 }
   0x9   :  { %40 = vtanh.f32 %v17_v7 }
  0x13   :  { %v35_v8 = vpop.eup %34 }
  0x14   :  { %v37_v9 = vpop.eup %36 }
  0x15   :  { %v39_v10 = vpop.eup %38  ;;  %v20_v11 = vsub.f32 %v35_v8, %v37_v9 }
  0x16   :  { %v41_v12 = vpop.eup %40 }
  0x17   :  { %v22_v13 = vmul.f32 0.5, %v20_v11  ;;  %v21_v14 = vsub.f32 %v39_v10, %v41_v12 }
  0x19   :  { %v24_v15 = vadd.f32 1.0, %v22_v13  ;;  %v23_v16 = vmul.f32 0.5, %v21_v14 }
  0x1b   :  { %26 = vst [vmem:[%s65_s1] sm:$0xff] %v24_v15  ;;  %v25_v17 = vadd.f32 1.0, %v23_v16 }
  0x1d   :  { %27 = vst [vmem:[%s65_s1 + $0x8] sm:$0xff] %v25_v17 }

</bundles_post_ra>
